<compile_context>
chip_gen: v7x
topology: tpu7x:2x2x1
jax: 0.10.0
libtpu: 0.0.40
codegen_flags: <defaults>
</compile_context>

<pallas_src>
import functools
import math

import jax
import jax.numpy as jnp
from jax.experimental import pallas as pl
from jax.experimental.pallas import tpu as pltpu


DIM_IN = 32
DIM_HIDDEN = 64
DIM_OUT = 16
PACK = 2                         # batch rows packed per lane-row
PACK_IN = PACK * DIM_IN          # 64 lanes of packed input
HP = PACK * DIM_HIDDEN           # 128 lanes of packed hidden / output


def _round_up(x, m):
    return (x + m - 1) // m * m


def _cdiv(a, b):
    return -(-a // b)


def _gelu_exact(x):
    # torch.nn.GELU() default: 0.5 * x * (1 + erf(x / sqrt(2)))
    return 0.5 * x * (1.0 + jax.lax.erf(x * jnp.float32(1.0 / math.sqrt(2.0))))


def _gelu_tanh(x):
    # tanh-approx GELU: transcendental goes to the (otherwise idle) EUP slot.
    c = jnp.float32(math.sqrt(2.0 / math.pi))
    return 0.5 * x * (1.0 + jnp.tanh(c * (x + jnp.float32(0.044715) * x * x * x)))


def ffn_kernel(x_ref, w_ref, b_ref, o_ref, *, approximate_gelu):
    """Fused forward pass over a (tile, PACK_IN) packed batch tile.

    x_ref: (tile, 64) bf16  — lanes 0..31 = row 2i, lanes 32..63 = row 2i+1.
    w_ref: (4, 128, 128) bf16 block-diagonal packed weights
       [0] rows 0..63 used: block-diag W_in (32->64) duplicated
       [1],[2] block-diag 64x64 residual weights duplicated
       [3] block-diag W_out; real outputs land at lanes 0..15 and 64..79
    b_ref: (4, 1, 128) f32 duplicated / padded biases.
    o_ref: (tile, 128) f32 lane-dense padded output.
    """
    f32 = jnp.float32
    bf16 = jnp.bfloat16
    act = _gelu_tanh if approximate_gelu else _gelu_exact

    x = x_ref[...]                                                 # (tile, 64) bf16

    # Linear(dim_in -> dim_hidden) + GELU   (both packed rows at once)
    h = jnp.dot(x, w_ref[0, :PACK_IN, :], preferred_element_type=f32) + b_ref[0]
    h = act(h)                                                     # (tile, 128) f32

    # ResBlock #1: h = h + GELU(Linear(h))
    r = jnp.dot(h.astype(bf16), w_ref[1], preferred_element_type=f32) + b_ref[1]
    h = h + act(r)

    # ResBlock #2
    r = jnp.dot(h.astype(bf16), w_ref[2], preferred_element_type=f32) + b_ref[2]
    h = h + act(r)

    # Output Linear — full 128-wide lane-dense store, unpacked in the wrapper.
    out = jnp.dot(h.astype(bf16), w_ref[3], preferred_element_type=f32) + b_ref[3]
    o_ref[...] = out.astype(o_ref.dtype)


def ffn_pallas(x, w_all, b_all, *, approximate_gelu=False):
    """x: (B, 32) f32.  Returns (B, 16) f32."""
    B = x.shape[0]
    B_pairs = _cdiv(B, PACK)

    # Tile choice: one big step for small/medium batches; >= 2 'parallel' tiles
    # for larger batches so both v7x TensorCores get work (on single-TC v5e/v6e
    # the extra step costs ~0.35us, negligible).  Per-step VMEM is << 2 MiB, so
    # no generation needs smaller tiles.
    if B_pairs <= 256:
        tile = _round_up(B_pairs, 8)
        n_tiles = 1
    else:
        tile = min(_round_up(_cdiv(B_pairs, 2), 8), 1024)
        n_tiles = _cdiv(B_pairs, tile)
    B2p = tile * n_tiles

    # Pack: bf16 once (halves input DMA), pad batch, fold row pairs into lanes.
    xb = x.astype(jnp.bfloat16)
    xb = jnp.pad(xb, ((0, PACK * B2p - B), (0, 0)))
    x2 = xb.reshape(B2p, PACK_IN)

    flops = int(B2p) * 2 * (PACK_IN * HP + 3 * HP * HP)
    transcendentals = int(B2p) * 3 * HP
    bytes_accessed = int(B2p * PACK_IN * 2 + B2p * HP * 4
                         + w_all.size * 2 + b_all.size * 4)

    def run(single_buffer_params):
        if single_buffer_params:
            w_spec = pl.BlockSpec(w_all.shape, lambda i: (0, 0, 0),
                                  pipeline_mode=pl.Buffered(1))
            b_spec = pl.BlockSpec(b_all.shape, lambda i: (0, 0, 0),
                                  pipeline_mode=pl.Buffered(1))
        else:
            w_spec = pl.BlockSpec(w_all.shape, lambda i: (0, 0, 0))
            b_spec = pl.BlockSpec(b_all.shape, lambda i: (0, 0, 0))
        return pl.pallas_call(
            functools.partial(ffn_kernel, approximate_gelu=approximate_gelu),
            out_shape=jax.ShapeDtypeStruct((B2p, HP), jnp.float32),
            grid=(n_tiles,),
            in_specs=[
                pl.BlockSpec((tile, PACK_IN), lambda i: (i, 0)),
                w_spec,
                b_spec,
            ],
            out_specs=pl.BlockSpec((tile, HP), lambda i: (i, 0)),
            compiler_params=pltpu.CompilerParams(
                dimension_semantics=("parallel",)),
            cost_estimate=pl.CostEstimate(
                flops=flops, transcendentals=transcendentals,
                bytes_accessed=bytes_accessed),
        )(x2, w_all, b_all)

    try:
        out2 = run(True)
    except Exception:
        # Installed jax/mosaic rejects single-buffered pipeline_mode; params are
        # only 132 KB so double-buffering them is harmless.
        out2 = run(False)

    # Unpack: row pair (2i, 2i+1) outputs live at lanes 0..15 and 64..79.
    out = out2.reshape(B2p, PACK, DIM_HIDDEN)[:, :, :DIM_OUT]
    return out.reshape(PACK * B2p, DIM_OUT)[:B]


def init_params(key):
    # nn.Linear-style uniform(-1/sqrt(fan_in), +1/sqrt(fan_in)) init.
    def linear(k, fan_in, fan_out):
        kw, kb = jax.random.split(k)
        bound = 1.0 / math.sqrt(fan_in)
        w = jax.random.uniform(kw, (fan_in, fan_out), jnp.float32, -bound, bound)
        b = jax.random.uniform(kb, (fan_out,), jnp.float32, -bound, bound)
        return w, b

    k0, k1, k2, k3 = jax.random.split(key, 4)
    w0, b0 = linear(k0, DIM_IN, DIM_HIDDEN)
    w1, b1 = linear(k1, DIM_HIDDEN, DIM_HIDDEN)
    w2, b2 = linear(k2, DIM_HIDDEN, DIM_HIDDEN)
    wo, bo = linear(k3, DIM_HIDDEN, DIM_OUT)
    return (w0, b0, w1, b1, w2, b2, wo, bo)


def pack_params(params):
    """Pack the 8 parameter arrays into a block-diagonal (row-pair) layout:
    one (4,128,128) bf16 weight stack + one (4,1,128) f32 bias stack."""
    (w0, b0, w1, b1, w2, b2, wo, bo) = params
    H = DIM_HIDDEN

    w_all = jnp.zeros((4, HP, HP), jnp.float32)
    # layer 0: input lanes 0..31 -> hidden lanes 0..63; lanes 32..63 -> 64..127
    w_all = w_all.at[0, 0:DIM_IN, 0:H].set(w0)
    w_all = w_all.at[0, DIM_IN:PACK_IN, H:2 * H].set(w0)
    # residual layers: 64x64 block-diag, duplicated
    w_all = w_all.at[1, 0:H, 0:H].set(w1)
    w_all = w_all.at[1, H:2 * H, H:2 * H].set(w1)
    w_all = w_all.at[2, 0:H, 0:H].set(w2)
    w_all = w_all.at[2, H:2 * H, H:2 * H].set(w2)
    # output layer: real outputs at lanes 0..15 and 64..79
    w_all = w_all.at[3, 0:H, 0:DIM_OUT].set(wo)
    w_all = w_all.at[3, H:2 * H, H:H + DIM_OUT].set(wo)

    b_all = jnp.zeros((4, 1, HP), jnp.float32)
    b_all = b_all.at[0, 0, 0:H].set(b0)
    b_all = b_all.at[0, 0, H:2 * H].set(b0)
    b_all = b_all.at[1, 0, 0:H].set(b1)
    b_all = b_all.at[1, 0, H:2 * H].set(b1)
    b_all = b_all.at[2, 0, 0:H].set(b2)
    b_all = b_all.at[2, 0, H:2 * H].set(b2)
    b_all = b_all.at[3, 0, 0:DIM_OUT].set(bo)
    b_all = b_all.at[3, 0, H:H + DIM_OUT].set(bo)
    return w_all.astype(jnp.bfloat16), b_all


def ffn_reference_matched(x, params):
    # Pure-JAX reference with the SAME bf16-operand / f32-accumulate recipe.
    (w0, b0, w1, b1, w2, b2, wo, bo) = params
    bf16 = jnp.bfloat16
    f32 = jnp.float32

    def dot(a, w):
        return jnp.dot(a.astype(bf16), w.astype(bf16), preferred_element_type=f32)

    h = _gelu_exact(dot(x, w0) + b0)
    h = h + _gelu_exact(dot(h, w1) + b1)
    h = h + _gelu_exact(dot(h, w2) + b2)
    return dot(h, wo) + bo


def ffn_reference_exact(x, params):
    # Full-f32 reference of the original PyTorch module semantics.
    (w0, b0, w1, b1, w2, b2, wo, bo) = params
    h = _gelu_exact(x @ w0 + b0)
    h = h + _gelu_exact(h @ w1 + b1)
    h = h + _gelu_exact(h @ w2 + b2)
    return h @ wo + bo


if __name__ == "__main__":
    key = jax.random.PRNGKey(0)
    kx, kp = jax.random.split(key)
    params = init_params(kp)
    w_all, b_all = pack_params(params)

    # batch=2/7: single 8-pair tile (odd batch exercises the pair padding);
    # batch=16: single tile; batch=1000: two parallel 256-pair tiles.
    for batch in (2, 7, 16, 1000):
        x = jax.random.normal(jax.random.fold_in(kx, batch),
                              (batch, DIM_IN), dtype=jnp.float32)
        out = jax.block_until_ready(ffn_pallas(x, w_all, b_all))
        assert out.shape == (batch, DIM_OUT)

        ref = ffn_reference_matched(x, params)
        err = float(jnp.max(jnp.abs(out - ref)))
        assert jnp.allclose(out, ref, atol=2e-3, rtol=2e-3), \
            f"batch={batch}: max abs err vs matched ref = {err}"

        ref32 = ffn_reference_exact(x, params)
        err32 = float(jnp.max(jnp.abs(out - ref32)))
        assert jnp.allclose(out, ref32, atol=5e-2, rtol=5e-2), \
            f"batch={batch}: max abs err vs exact f32 ref = {err32} (bf16 operands)"

    print("KERNEL_OK")
</pallas_src>

<mosaic_0001>
module attributes {stable_mosaic.version = 11 : i64} {
  func.func @ffn_kernel(%arg0: i32, %arg1: memref<8x64xbf16, #tpu.memory_space<vmem>>, %arg2: memref<4x128x128xbf16, #tpu.memory_space<vmem>>, %arg3: memref<4x1x128xf32, #tpu.memory_space<vmem>>, %arg4: memref<8x128xf32, #tpu.memory_space<vmem>>) attributes {dimension_semantics = [#tpu.dimension_semantics<parallel>], iteration_bounds = array<i64: 1>, scalar_prefetch = 0 : i64, scratch_operands = 0 : i64, tpu.core_type = #tpu.core_type<tc>, window_params = [{transform_indices = @transform_0, window_bounds = array<i64: 8, 64>}, {pipeline_mode = #tpu.pipeline_mode<synchronous>, transform_indices = @transform_1, window_bounds = array<i64: 4, 128, 128>}, {pipeline_mode = #tpu.pipeline_mode<synchronous>, transform_indices = @transform_2, window_bounds = array<i64: 4, 1, 128>}, {transform_indices = @transform_3, window_bounds = array<i64: 8, 128>}]} {
    %c0 = arith.constant 0 : index
    %c0_0 = arith.constant 0 : index
    %0 = vector.load %arg1[%c0, %c0_0] : memref<8x64xbf16, #tpu.memory_space<vmem>>, vector<8x64xbf16>
    %c0_1 = arith.constant 0 : index
    %c0_2 = arith.constant 0 : index
    %c0_3 = arith.constant 0 : index
    %1 = vector.load %arg2[%c0_1, %c0_2, %c0_3] : memref<4x128x128xbf16, #tpu.memory_space<vmem>>, vector<1x64x128xbf16>
    %2 = vector.shape_cast %1 : vector<1x64x128xbf16> to vector<64x128xbf16>
    %cst = arith.constant dense<0.000000e+00> : vector<8x128xf32>
    %3 = tpu.matmul %0, %2, %cst {dimension_numbers = #tpu.dot_dimension_numbers<[1], [0], [0], [1], [0, 0, 1, 1], [], []>} : vector<8x64xbf16>, vector<64x128xbf16>, vector<8x128xf32> -> vector<8x128xf32>
    %c0_4 = arith.constant 0 : index
    %c0_5 = arith.constant 0 : index
    %c0_6 = arith.constant 0 : index
    %4 = vector.load %arg3[%c0_4, %c0_5, %c0_6] : memref<4x1x128xf32, #tpu.memory_space<vmem>>, vector<1x1x128xf32>
    %5 = vector.shape_cast %4 : vector<1x1x128xf32> to vector<1x128xf32>
    %6 = vector.broadcast %5 : vector<1x128xf32> to vector<8x128xf32>
    %7 = arith.addf %3, %6 : vector<8x128xf32>
    %cst_7 = arith.constant 5.000000e-01 : f32
    %8 = vector.broadcast %cst_7 : f32 to vector<8x128xf32>
    %9 = arith.mulf %8, %7 : vector<8x128xf32>
    %cst_8 = arith.constant 0.707106769 : f32
    %10 = vector.broadcast %cst_8 : f32 to vector<8x128xf32>
    %11 = arith.mulf %7, %10 : vector<8x128xf32>
    %12 = math.erf %11 : vector<8x128xf32>
    %cst_9 = arith.constant 1.000000e+00 : f32
    %13 = vector.broadcast %cst_9 : f32 to vector<8x128xf32>
    %14 = arith.addf %13, %12 : vector<8x128xf32>
    %15 = arith.mulf %9, %14 : vector<8x128xf32>
    %16 = arith.truncf %15 : vector<8x128xf32> to vector<8x128xbf16>
    %c1 = arith.constant 1 : index
    %c0_10 = arith.constant 0 : index
    %c0_11 = arith.constant 0 : index
    %17 = vector.load %arg2[%c1, %c0_10, %c0_11] : memref<4x128x128xbf16, #tpu.memory_space<vmem>>, vector<1x128x128xbf16>
    %18 = vector.shape_cast %17 : vector<1x128x128xbf16> to vector<128x128xbf16>
    %cst_12 = arith.constant dense<0.000000e+00> : vector<8x128xf32>
    %19 = tpu.matmul %16, %18, %cst_12 {dimension_numbers = #tpu.dot_dimension_numbers<[1], [0], [0], [1], [0, 0, 1, 1], [], []>} : vector<8x128xbf16>, vector<128x128xbf16>, vector<8x128xf32> -> vector<8x128xf32>
    %c1_13 = arith.constant 1 : index
    %c0_14 = arith.constant 0 : index
    %c0_15 = arith.constant 0 : index
    %20 = vector.load %arg3[%c1_13, %c0_14, %c0_15] : memref<4x1x128xf32, #tpu.memory_space<vmem>>, vector<1x1x128xf32>
    %21 = vector.shape_cast %20 : vector<1x1x128xf32> to vector<1x128xf32>
    %22 = vector.broadcast %21 : vector<1x128xf32> to vector<8x128xf32>
    %23 = arith.addf %19, %22 : vector<8x128xf32>
    %cst_16 = arith.constant 5.000000e-01 : f32
    %24 = vector.broadcast %cst_16 : f32 to vector<8x128xf32>
    %25 = arith.mulf %24, %23 : vector<8x128xf32>
    %cst_17 = arith.constant 0.707106769 : f32
    %26 = vector.broadcast %cst_17 : f32 to vector<8x128xf32>
    %27 = arith.mulf %23, %26 : vector<8x128xf32>
    %28 = math.erf %27 : vector<8x128xf32>
    %cst_18 = arith.constant 1.000000e+00 : f32
    %29 = vector.broadcast %cst_18 : f32 to vector<8x128xf32>
    %30 = arith.addf %29, %28 : vector<8x128xf32>
    %31 = arith.mulf %25, %30 : vector<8x128xf32>
    %32 = arith.addf %15, %31 : vector<8x128xf32>
    %33 = arith.truncf %32 : vector<8x128xf32> to vector<8x128xbf16>
    %c2 = arith.constant 2 : index
    %c0_19 = arith.constant 0 : index
    %c0_20 = arith.constant 0 : index
    %34 = vector.load %arg2[%c2, %c0_19, %c0_20] : memref<4x128x128xbf16, #tpu.memory_space<vmem>>, vector<1x128x128xbf16>
    %35 = vector.shape_cast %34 : vector<1x128x128xbf16> to vector<128x128xbf16>
    %cst_21 = arith.constant dense<0.000000e+00> : vector<8x128xf32>
    %36 = tpu.matmul %33, %35, %cst_21 {dimension_numbers = #tpu.dot_dimension_numbers<[1], [0], [0], [1], [0, 0, 1, 1], [], []>} : vector<8x128xbf16>, vector<128x128xbf16>, vector<8x128xf32> -> vector<8x128xf32>
    %c2_22 = arith.constant 2 : index
    %c0_23 = arith.constant 0 : index
    %c0_24 = arith.constant 0 : index
    %37 = vector.load %arg3[%c2_22, %c0_23, %c0_24] : memref<4x1x128xf32, #tpu.memory_space<vmem>>, vector<1x1x128xf32>
    %38 = vector.shape_cast %37 : vector<1x1x128xf32> to vector<1x128xf32>
    %39 = vector.broadcast %38 : vector<1x128xf32> to vector<8x128xf32>
    %40 = arith.addf %36, %39 : vector<8x128xf32>
    %cst_25 = arith.constant 5.000000e-01 : f32
    %41 = vector.broadcast %cst_25 : f32 to vector<8x128xf32>
    %42 = arith.mulf %41, %40 : vector<8x128xf32>
    %cst_26 = arith.constant 0.707106769 : f32
    %43 = vector.broadcast %cst_26 : f32 to vector<8x128xf32>
    %44 = arith.mulf %40, %43 : vector<8x128xf32>
    %45 = math.erf %44 : vector<8x128xf32>
    %cst_27 = arith.constant 1.000000e+00 : f32
    %46 = vector.broadcast %cst_27 : f32 to vector<8x128xf32>
    %47 = arith.addf %46, %45 : vector<8x128xf32>
    %48 = arith.mulf %42, %47 : vector<8x128xf32>
    %49 = arith.addf %32, %48 : vector<8x128xf32>
    %50 = arith.truncf %49 : vector<8x128xf32> to vector<8x128xbf16>
    %c3 = arith.constant 3 : index
    %c0_28 = arith.constant 0 : index
    %c0_29 = arith.constant 0 : index
    %51 = vector.load %arg2[%c3, %c0_28, %c0_29] : memref<4x128x128xbf16, #tpu.memory_space<vmem>>, vector<1x128x128xbf16>
    %52 = vector.shape_cast %51 : vector<1x128x128xbf16> to vector<128x128xbf16>
    %cst_30 = arith.constant dense<0.000000e+00> : vector<8x128xf32>
    %53 = tpu.matmul %50, %52, %cst_30 {dimension_numbers = #tpu.dot_dimension_numbers<[1], [0], [0], [1], [0, 0, 1, 1], [], []>} : vector<8x128xbf16>, vector<128x128xbf16>, vector<8x128xf32> -> vector<8x128xf32>
    %c3_31 = arith.constant 3 : index
    %c0_32 = arith.constant 0 : index
    %c0_33 = arith.constant 0 : index
    %54 = vector.load %arg3[%c3_31, %c0_32, %c0_33] : memref<4x1x128xf32, #tpu.memory_space<vmem>>, vector<1x1x128xf32>
    %55 = vector.shape_cast %54 : vector<1x1x128xf32> to vector<1x128xf32>
    %56 = vector.broadcast %55 : vector<1x128xf32> to vector<8x128xf32>
    %57 = arith.addf %53, %56 : vector<8x128xf32>
    %c0_34 = arith.constant 0 : index
    %c0_35 = arith.constant 0 : index
    %58 = vector.load %arg4[%c0_34, %c0_35] : memref<8x128xf32, #tpu.memory_space<vmem>>, vector<8x128xf32>
    tpu.vector_store %arg4[%c0_34, %c0_35], %57 {strides = array<i32>} : memref<8x128xf32, #tpu.memory_space<vmem>>, vector<8x128xf32>,
    return
  }
  func.func @transform_0(%arg0: i32) -> (i32, i32) {
    %c0_i32 = arith.constant 0 : i32
    %c0_i32_0 = arith.constant 0 : i32
    return %arg0, %c0_i32 : i32, i32
  }
  func.func @transform_1(%arg0: i32) -> (i32, i32, i32) {
    %c0_i32 = arith.constant 0 : i32
    %c0_i32_0 = arith.constant 0 : i32
    %c0_i32_1 = arith.constant 0 : i32
    %c0_i32_2 = arith.constant 0 : i32
    return %c0_i32, %c0_i32_0, %c0_i32_1 : i32, i32, i32
  }
  func.func @transform_2(%arg0: i32) -> (i32, i32, i32) {
    %c0_i32 = arith.constant 0 : i32
    %c0_i32_0 = arith.constant 0 : i32
    %c0_i32_1 = arith.constant 0 : i32
    %c0_i32_2 = arith.constant 0 : i32
    return %c0_i32, %c0_i32_0, %c0_i32_1 : i32, i32, i32
  }
  func.func @transform_3(%arg0: i32) -> (i32, i32) {
    %c0_i32 = arith.constant 0 : i32
    %c0_i32_0 = arith.constant 0 : i32
    return %arg0, %c0_i32 : i32, i32
  }
}

module attributes {stable_mosaic.version = 11 : i64} {
  func.func @ffn_kernel(%arg0: i32, %arg1: memref<8x64xbf16, #tpu.memory_space<vmem>>, %arg2: memref<4x128x128xbf16, #tpu.memory_space<vmem>>, %arg3: memref<4x1x128xf32, #tpu.memory_space<vmem>>, %arg4: memref<8x128xf32, #tpu.memory_space<vmem>>) attributes {dimension_semantics = [#tpu.dimension_semantics<parallel>], iteration_bounds = array<i64: 1>, scalar_prefetch = 0 : i64, scratch_operands = 0 : i64, tpu.core_type = #tpu.core_type<tc>, window_params = [{transform_indices = @transform_0, window_bounds = array<i64: 8, 64>}, {pipeline_mode = #tpu.pipeline_mode<synchronous>, transform_indices = @transform_1, window_bounds = array<i64: 4, 128, 128>}, {pipeline_mode = #tpu.pipeline_mode<synchronous>, transform_indices = @transform_2, window_bounds = array<i64: 4, 1, 128>}, {transform_indices = @transform_3, window_bounds = array<i64: 8, 128>}]} {
    %c0 = arith.constant 0 : index
    %c0_0 = arith.constant 0 : index
    %0 = vector.load %arg1[%c0, %c0_0] : memref<8x64xbf16, #tpu.memory_space<vmem>>, vector<8x64xbf16>
    %c0_1 = arith.constant 0 : index
    %c0_2 = arith.constant 0 : index
    %c0_3 = arith.constant 0 : index
    %1 = vector.load %arg2[%c0_1, %c0_2, %c0_3] : memref<4x128x128xbf16, #tpu.memory_space<vmem>>, vector<1x64x128xbf16>
    %2 = vector.shape_cast %1 : vector<1x64x128xbf16> to vector<64x128xbf16>
    %cst = arith.constant dense<0.000000e+00> : vector<8x128xf32>
    %3 = tpu.matmul %0, %2, %cst {dimension_numbers = #tpu.dot_dimension_numbers<[1], [0], [0], [1], [0, 0, 1, 1], [], []>} : vector<8x64xbf16>, vector<64x128xbf16>, vector<8x128xf32> -> vector<8x128xf32>
    %c0_4 = arith.constant 0 : index
    %c0_5 = arith.constant 0 : index
    %c0_6 = arith.constant 0 : index
    %4 = vector.load %arg3[%c0_4, %c0_5, %c0_6] : memref<4x1x128xf32, #tpu.memory_space<vmem>>, vector<1x1x128xf32>
    %5 = vector.shape_cast %4 : vector<1x1x128xf32> to vector<1x128xf32>
    %6 = vector.broadcast %5 : vector<1x128xf32> to vector<8x128xf32>
    %7 = arith.addf %3, %6 : vector<8x128xf32>
    %cst_7 = arith.constant 5.000000e-01 : f32
    %8 = vector.broadcast %cst_7 : f32 to vector<8x128xf32>
    %9 = arith.mulf %8, %7 : vector<8x128xf32>
    %cst_8 = arith.constant 0.707106769 : f32
    %10 = vector.broadcast %cst_8 : f32 to vector<8x128xf32>
    %11 = arith.mulf %7, %10 : vector<8x128xf32>
    %12 = math.erf %11 : vector<8x128xf32>
    %cst_9 = arith.constant 1.000000e+00 : f32
    %13 = vector.broadcast %cst_9 : f32 to vector<8x128xf32>
    %14 = arith.addf %13, %12 : vector<8x128xf32>
    %15 = arith.mulf %9, %14 : vector<8x128xf32>
    %16 = arith.truncf %15 : vector<8x128xf32> to vector<8x128xbf16>
    %c1 = arith.constant 1 : index
    %c0_10 = arith.constant 0 : index
    %c0_11 = arith.constant 0 : index
    %17 = vector.load %arg2[%c1, %c0_10, %c0_11] : memref<4x128x128xbf16, #tpu.memory_space<vmem>>, vector<1x128x128xbf16>
    %18 = vector.shape_cast %17 : vector<1x128x128xbf16> to vector<128x128xbf16>
    %cst_12 = arith.constant dense<0.000000e+00> : vector<8x128xf32>
    %19 = tpu.matmul %16, %18, %cst_12 {dimension_numbers = #tpu.dot_dimension_numbers<[1], [0], [0], [1], [0, 0, 1, 1], [], []>} : vector<8x128xbf16>, vector<128x128xbf16>, vector<8x128xf32> -> vector<8x128xf32>
    %c1_13 = arith.constant 1 : index
    %c0_14 = arith.constant 0 : index
    %c0_15 = arith.constant 0 : index
    %20 = vector.load %arg3[%c1_13, %c0_14, %c0_15] : memref<4x1x128xf32, #tpu.memory_space<vmem>>, vector<1x1x128xf32>
    %21 = vector.shape_cast %20 : vector<1x1x128xf32> to vector<1x128xf32>
    %22 = vector.broadcast %21 : vector<1x128xf32> to vector<8x128xf32>
    %23 = arith.addf %19, %22 : vector<8x128xf32>
    %cst_16 = arith.constant 5.000000e-01 : f32
    %24 = vector.broadcast %cst_16 : f32 to vector<8x128xf32>
    %25 = arith.mulf %24, %23 : vector<8x128xf32>
    %cst_17 = arith.constant 0.707106769 : f32
    %26 = vector.broadcast %cst_17 : f32 to vector<8x128xf32>
    %27 = arith.mulf %23, %26 : vector<8x128xf32>
    %28 = math.erf %27 : vector<8x128xf32>
    %cst_18 = arith.constant 1.000000e+00 : f32
    %29 = vector.broadcast %cst_18 : f32 to vector<8x128xf32>
    %30 = arith.addf %29, %28 : vector<8x128xf32>
    %31 = arith.mulf %25, %30 : vector<8x128xf32>
    %32 = arith.addf %15, %31 : vector<8x128xf32>
    %33 = arith.truncf %32 : vector<8x128xf32> to vector<8x128xbf16>
    %c2 = arith.constant 2 : index
    %c0_19 = arith.constant 0 : index
    %c0_20 = arith.constant 0 : index
    %34 = vector.load %arg2[%c2, %c0_19, %c0_20] : memref<4x128x128xbf16, #tpu.memory_space<vmem>>, vector<1x128x128xbf16>
    %35 = vector.shape_cast %34 : vector<1x128x128xbf16> to vector<128x128xbf16>
    %cst_21 = arith.constant dense<0.000000e+00> : vector<8x128xf32>
    %36 = tpu.matmul %33, %35, %cst_21 {dimension_numbers = #tpu.dot_dimension_numbers<[1], [0], [0], [1], [0, 0, 1, 1], [], []>} : vector<8x128xbf16>, vector<128x128xbf16>, vector<8x128xf32> -> vector<8x128xf32>
    %c2_22 = arith.constant 2 : index
    %c0_23 = arith.constant 0 : index
    %c0_24 = arith.constant 0 : index
    %37 = vector.load %arg3[%c2_22, %c0_23, %c0_24] : memref<4x1x128xf32, #tpu.memory_space<vmem>>, vector<1x1x128xf32>
    %38 = vector.shape_cast %37 : vector<1x1x128xf32> to vector<1x128xf32>
    %39 = vector.broadcast %38 : vector<1x128xf32> to vector<8x128xf32>
    %40 = arith.addf %36, %39 : vector<8x128xf32>
    %cst_25 = arith.constant 5.000000e-01 : f32
    %41 = vector.broadcast %cst_25 : f32 to vector<8x128xf32>
    %42 = arith.mulf %41, %40 : vector<8x128xf32>
    %cst_26 = arith.constant 0.707106769 : f32
    %43 = vector.broadcast %cst_26 : f32 to vector<8x128xf32>
    %44 = arith.mulf %40, %43 : vector<8x128xf32>
    %45 = math.erf %44 : vector<8x128xf32>
    %cst_27 = arith.constant 1.000000e+00 : f32
    %46 = vector.broadcast %cst_27 : f32 to vector<8x128xf32>
    %47 = arith.addf %46, %45 : vector<8x128xf32>
    %48 = arith.mulf %42, %47 : vector<8x128xf32>
    %49 = arith.addf %32, %48 : vector<8x128xf32>
    %50 = arith.truncf %49 : vector<8x128xf32> to vector<8x128xbf16>
    %c3 = arith.constant 3 : index
    %c0_28 = arith.constant 0 : index
    %c0_29 = arith.constant 0 : index
    %51 = vector.load %arg2[%c3, %c0_28, %c0_29] : memref<4x128x128xbf16, #tpu.memory_space<vmem>>, vector<1x128x128xbf16>
    %52 = vector.shape_cast %51 : vector<1x128x128xbf16> to vector<128x128xbf16>
    %cst_30 = arith.constant dense<0.000000e+00> : vector<8x128xf32>
    %53 = tpu.matmul %50, %52, %cst_30 {dimension_numbers = #tpu.dot_dimension_numbers<[1], [0], [0], [1], [0, 0, 1, 1], [], []>} : vector<8x128xbf16>, vector<128x128xbf16>, vector<8x128xf32> -> vector<8x128xf32>
    %c3_31 = arith.constant 3 : index
    %c0_32 = arith.constant 0 : index
    %c0_33 = arith.constant 0 : index
    %54 = vector.load %arg3[%c3_31, %c0_32, %c0_33] : memref<4x1x128xf32, #tpu.memory_space<vmem>>, vector<1x1x128xf32>
    %55 = vector.shape_cast %54 : vector<1x1x128xf32> to vector<1x128xf32>
    %56 = vector.broadcast %55 : vector<1x128xf32> to vector<8x128xf32>
    %57 = arith.addf %53, %56 : vector<8x128xf32>
    %c0_34 = arith.constant 0 : index
    %c0_35 = arith.constant 0 : index
    %58 = vector.load %arg4[%c0_34, %c0_35] : memref<8x128xf32, #tpu.memory_space<vmem>>, vector<8x128xf32>
    tpu.vector_store %arg4[%c0_34, %c0_35], %57 {strides = array<i32>} : memref<8x128xf32, #tpu.memory_space<vmem>>, vector<8x128xf32>,
    return
  }
  func.func @transform_0(%arg0: i32) -> (i32, i32) {
    %c0_i32 = arith.constant 0 : i32
    %c0_i32_0 = arith.constant 0 : i32
    return %arg0, %c0_i32 : i32, i32
  }
  func.func @transform_1(%arg0: i32) -> (i32, i32, i32) {
    %c0_i32 = arith.constant 0 : i32
    %c0_i32_0 = arith.constant 0 : i32
    %c0_i32_1 = arith.constant 0 : i32
    %c0_i32_2 = arith.constant 0 : i32
    return %c0_i32, %c0_i32_0, %c0_i32_1 : i32, i32, i32
  }
  func.func @transform_2(%arg0: i32) -> (i32, i32, i32) {
    %c0_i32 = arith.constant 0 : i32
    %c0_i32_0 = arith.constant 0 : i32
    %c0_i32_1 = arith.constant 0 : i32
    %c0_i32_2 = arith.constant 0 : i32
    return %c0_i32, %c0_i32_0, %c0_i32_1 : i32, i32, i32
  }
  func.func @transform_3(%arg0: i32) -> (i32, i32) {
    %c0_i32 = arith.constant 0 : i32
    %c0_i32_0 = arith.constant 0 : i32
    return %arg0, %c0_i32 : i32, i32
  }
}

</mosaic_0001>

<bundles_post_ra>
// kernel: tpu_custom_call.1
= control target key start
LH: loop header
LB: loop body
LE: loop exit
PB: predicated region body
PF: predicated region fallthrough
CT: control target
= control target key end

     0   :  { %8 = vsyncpa [#allocation3], 0  ;;  %s873_s0 = inlined_call_operand.hbm [shape: bf16[8,64], index: 0, kind: input, shape index: {}]   ;;  %s874_s1 = inlined_call_operand.hbm [shape: bf16[4,128,128], index: 1, kind: input, shape index: {}]   ;;  %s875_s2 = inlined_call_operand.vmem [shape: f32[4,1,128], index: 2, kind: input, shape index: {}]   ;;  %s876_s3 = inlined_call_operand.hbm [shape: f32[8,128], index: 3, kind: output, shape index: {}]  }
   0x1   :  { %9 = vsyncpa [#allocation6], 0 }
   0x2   :  { %10 = vsyncpa [#allocation4], 0  ;;  %s755_s12 = smov [#allocation2]   ;;  %s756_s14 = smov [#allocation5]  }
   0x3   :  { %s17_s13 = sshll.u32 %s755_s12, 4  ;;  %s26_s15 = sshll.u32 %s756_s14, 4  ;;  %s18_s13 = int_to_ptr.vmem [resolvable:$true] %s17_s13  ;;  %s782_s15 = int_to_ptr.vmem [resolvable:$true] %s26_s15 }
   0x4   :  { %s683_s18 = scalar_lea.hbm %s873_s0, 64 }
   0x5   :  { %p684_p0 = scmp.ne.s32.totalorder %s873_s0, %s683_s18  ;;  %p687_p1 = scmp.lt.u32.totalorder %s683_s18, %s873_s0 }
   0x7   :  { %p689_p2 = pnand %p687_p1, %p684_p0 }
   0x9   :  { %692 = shalt.err (!%p689_p2)
}
   0xa   :  { %s693_s23 = scalar_lea.vmem %s18_s13, 64  ;;  %p698_p4 = scmp.lt.s32.totalorder %s18_s13, %s18_s13 }
   0xb   :  { %p694_p3 = scmp.ne.s32.totalorder %s18_s13, %s693_s23  ;;  %p699_p5 = scmp.lt.s32.totalorder %s693_s23, %s693_s23 }
   0xd   :  { %p700_p6 = por %p699_p5, %p698_p4 }
   0xf   :  { %p701_p7 = pnand %p700_p6, %p694_p3 }
  0x11   :  { %704 = shalt.err (!%p701_p7)
}
  0x12   :  { %20 = dma.hbm_to_vmem [thread:$0]  %s873_s0, 64, %s18_s13, [#allocation3]  }
  0x13   :  { %s705_s28 = scalar_lea.hbm %s874_s1, 4096 }
  0x14   :  { %p706_p8 = scmp.ne.s32.totalorder %s874_s1, %s705_s28  ;;  %p709_p9 = scmp.lt.u32.totalorder %s705_s28, %s874_s1 }
  0x16   :  { %p711_p10 = pnand %p709_p9, %p706_p8 }
  0x18   :  { %714 = shalt.err (!%p711_p10)
}
  0x19   :  { %s715_s6 = scalar_lea.vmem %s782_s15, 4096  ;;  %p720_p12 = scmp.lt.s32.totalorder %s782_s15, %s782_s15 }
  0x1a   :  { %p716_p11 = scmp.ne.s32.totalorder %s782_s15, %s715_s6  ;;  %p721_p13 = scmp.lt.s32.totalorder %s715_s6, %s715_s6 }
  0x1c   :  { %p722_p0 = por %p721_p13, %p720_p12 }
  0x1e   :  { %p723_p1 = pnand %p722_p0, %p716_p11 }
  0x20   :  { %726 = shalt.err (!%p723_p1)
}
  0x21   :  { %s757_s0 = smov 64   ;;  %s758_s7 = smov 4  }
  0x22   :  { %32 = dma.hbm_to_vmem [thread:$0]  %s874_s1, 4096, %s782_s15, [#allocation6], %s757_s0, %s757_s0, %s758_s7  }
  0x23   :  { %749 = dma.done.wait [#allocation3], 64  }
  0x24   :  { %750 = vsyncadd [#allocation3], 4294967232 }
  0x25   :  { %751 = dma.done.wait [#allocation6], 4096  }
  0x26   :  { %752 = vsyncadd [#allocation6], 4294963200  ;;  %v759_v0 = vmov 0.0   ;;  %vm760_vm0 = vmmov 0   ;;  %v649_v1 = vld [vmem:[#allocation5] sm:$0xff]   ;;  %v650_v2 = vld [vmem:[#allocation5 + $0x8] sm:$0xff]  }
  0x27   :  { %570 = vmatprep.subr.bf16.mxu0 %v759_v0  ;;  %578 = vmatprep.mubr.msk.bf16.mxu0 %vm760_vm0, %v759_v0  ;;  %v653_v3 = vld [vmem:[#allocation5 + $0x40] sm:$0xff]   ;;  %v651_v4 = vld [vmem:[#allocation5 + $0x10] sm:$0xff]   ;;  %vm82_vm1 = vcmask 523264   ;;  %v654_v5 = vld [vmem:[#allocation5 + $0x48] sm:$0xff]   ;;  %s761_s17 = smov [#allocation7]  }
  0x28   :  { %582 = vmatprep.subr.bf16.mxu1 %v759_v0  ;;  %598 = vmatprep.mubr.msk.bf16.mxu1 %vm760_vm0, %v759_v0  ;;  %v652_v6 = vld [vmem:[#allocation5 + $0x18] sm:$0xff]   ;;  %v655_v7 = vld [vmem:[#allocation5 + $0x50] sm:$0xff]   ;;  %v657_v10 = vld [vmem:[#allocation5 + $0x60] sm:$0xff]   ;;  %s492_s18 = sshll.u32 %s761_s17, 4  ;;  %s493_s18 = int_to_ptr.vmem [resolvable:$true] %s492_s18 }
  0x29   :  { %571 = vmatpush3.bf16.msra.mxu0 %v649_v1  ;;  %583 = vmatpush3.bf16.msra.mxu1 %v653_v3  ;;  %v42_v8 = vld [vmem:[#allocation2] sm:$0xf]  ;;  %v658_v11 = vld [vmem:[#allocation5 + $0x68] sm:$0xff]   ;;  %v659_v12 = vld [vmem:[#allocation5 + $0x70] sm:$0xff]   ;;  %s727_s19 = scalar_lea.vmem %s493_s18, 128  ;;  %p732_p3 = scmp.lt.s32.totalorder %s493_s18, %s493_s18 }
  0x2a   :  { %572 = vmatprep.subr.bf16.mxu0 %v759_v0  ;;  %584 = vmatprep.subr.bf16.mxu1 %v759_v0  ;;  %v656_v9 = vld [vmem:[#allocation5 + $0x58] sm:$0xff]   ;;  %v661_v14 = vld [vmem:[#allocation5 + $0x80] sm:$0xff]   ;;  %v662_v15 = vld [vmem:[#allocation5 + $0x88] sm:$0xff]   ;;  %p728_p2 = scmp.ne.s32.totalorder %s493_s18, %s727_s19  ;;  %p733_p4 = scmp.lt.s32.totalorder %s727_s19, %s727_s19 }
  0x2b   :  { %v660_v13 = vld [vmem:[#allocation5 + $0x78] sm:$0xff]   ;;  %v663_v28 = vld [vmem:[#allocation5 + $0x90] sm:$0xff]   ;;  %v665_v30 = vld [vmem:[#allocation5 + $0xa0] sm:$0xff]  }
  0x2c   :  { %v502_v16 = vld [vmem:[%s875_s2] ss:$0 sm:$0xff]  ;;  %v666_v31 = vld [vmem:[#allocation5 + $0xa8] sm:$0xff]   ;;  %v667_v32 = vld [vmem:[#allocation5 + $0xb0] sm:$0xff]   ;;  %p734_p5 = por %p733_p4, %p732_p3 }
  0x2d   :  { %573 = vmatpush3.bf16.msra.mxu0 %v650_v2  ;;  %585 = vmatpush3.bf16.msra.mxu1 %v654_v5  ;;  %v664_v29 = vld [vmem:[#allocation5 + $0x98] sm:$0xff]   ;;  %v669_v34 = vld [vmem:[#allocation5 + $0xc0] sm:$0xff]   ;;  %v670_v35 = vld [vmem:[#allocation5 + $0xc8] sm:$0xff]  }
  0x2e   :  { %574 = vmatprep.subr.bf16.mxu0 %v759_v0  ;;  %586 = vmatprep.subr.bf16.mxu1 %v759_v0  ;;  %v668_v33 = vld [vmem:[#allocation5 + $0xb8] sm:$0xff]   ;;  %v671_v49 = vld [vmem:[#allocation5 + $0xd0] sm:$0xff]   ;;  %v673_v51 = vld [vmem:[#allocation5 + $0xe0] sm:$0xff]   ;;  %p735_p6 = pnand %p734_p5, %p728_p2 }
  0x2f   :  { %v509_v36 = vld [vmem:[%s875_s2 + $0x1] ss:$0 sm:$0xff]  ;;  %v674_v52 = vld [vmem:[#allocation5 + $0xe8] sm:$0xff]   ;;  %v675_v53 = vld [vmem:[#allocation5 + $0xf0] sm:$0xff]  }
  0x30   :  { %v672_v50 = vld [vmem:[#allocation5 + $0xd8] sm:$0xff]  }
  0x31   :  { %575 = vmatpush3.bf16.msra.mxu0 %v651_v4  ;;  %587 = vmatpush3.bf16.msra.mxu1 %v655_v7  ;;  %v676_v54 = vld [vmem:[#allocation5 + $0xf8] sm:$0xff]  }
  0x32   :  { %576 = vmatprep.subr.bf16.mxu0 %v759_v0  ;;  %588 = vmatprep.subr.bf16.mxu1 %v759_v0  ;;  %v519_v55 = vld [vmem:[%s875_s2 + $0x2] ss:$0 sm:$0xff] }
  0x35   :  { %577 = vmatpush3.bf16.msra.mxu0 %v652_v6  ;;  %589 = vmatpush3.bf16.msra.mxu1 %v656_v9 }
  0x36   :  { %602 = vmatprep.subr.bf16.mxu0 %v759_v0  ;;  %590 = vmatprep.subr.bf16.mxu1 %v759_v0 }
  0x38   :  { %579 = vmatmul.mubr.msk.bf16.vlgmr.msra.gmra.mrb[0].mxu0 %vm82_vm1, %v42_v8 }
  0x39   :  { %618 = vmatprep.mubr.msk.bf16.mxu0 %vm760_vm0, %v759_v0  ;;  %591 = vmatpush3.bf16.msra.mxu1 %v657_v10 }
  0x3a   :  { %592 = vmatprep.subr.bf16.mxu1 %v759_v0  ;;  %603 = vmatpush3.bf16.msra.mxu0 %v661_v14 }
  0x3b   :  { %604 = vmatprep.subr.bf16.mxu0 %v759_v0 }
  0x3d   :  { %593 = vmatpush3.bf16.msra.mxu1 %v658_v11 }
  0x3e   :  { %594 = vmatprep.subr.bf16.mxu1 %v759_v0  ;;  %605 = vmatpush3.bf16.msra.mxu0 %v662_v15 }
  0x3f   :  { %606 = vmatprep.subr.bf16.mxu0 %v759_v0 }
  0x41   :  { %595 = vmatpush3.bf16.msra.mxu1 %v659_v12 }
  0x42   :  { %596 = vmatprep.subr.bf16.mxu1 %v759_v0  ;;  %607 = vmatpush3.bf16.msra.mxu0 %v663_v28 }
  0x43   :  { %608 = vmatprep.subr.bf16.mxu0 %v759_v0 }
  0x45   :  { %597 = vmatpush3.bf16.msra.mxu1 %v660_v13 }
  0x46   :  { %622 = vmatprep.subr.bf16.mxu1 %v759_v0  ;;  %609 = vmatpush3.bf16.msra.mxu0 %v664_v29 }
  0x47   :  { %610 = vmatprep.subr.bf16.mxu0 %v759_v0 }
  0x4a   :  { %611 = vmatpush3.bf16.msra.mxu0 %v665_v30 }
  0x4b   :  { %612 = vmatprep.subr.bf16.mxu0 %v759_v0 }
  0x4e   :  { %613 = vmatpush3.bf16.msra.mxu0 %v666_v31 }
  0x4f   :  { %614 = vmatprep.subr.bf16.mxu0 %v759_v0 }
  0x52   :  { %615 = vmatpush3.bf16.msra.mxu0 %v667_v32 }
  0x53   :  { %616 = vmatprep.subr.bf16.mxu0 %v759_v0 }
  0x56   :  { %617 = vmatpush3.bf16.msra.mxu0 %v668_v33 }
 0x10b   :  { %v120_v17 = vpop.f32.mrb[0].mxu0 }
 0x10c   :  { %v121_v18 = vadd.f32 %v502_v16, %v120_v17  ;;  %v580_v19 = vpop.f32.mrb[1].mxu0 }
 0x10d   :  { %v123_v20 = vpop.f32.mrb[2].mxu0 }
 0x10e   :  { %v127_v21 = vmul.f32 0.70710677, %v121_v18  ;;  %v581_v22 = vpop.f32.mrb[3].mxu0  ;;  %v126_v24 = vmul.f32 0.5, %v121_v18 }
 0x110   :  { %677 = verf.f32 %v127_v21 }
 0x11a   :  { %v678_v23 = vpop.eup %677 }
 0x11b   :  { %v129_v25 = vadd.f32 1.0, %v678_v23 }
 0x11d   :  { %v130_v26 = vmul.f32 %v129_v25, %v126_v24 }
 0x11f   :  { %v131_v27 = vpack.c.bf16 %v130_v26, %v130_v26 }
 0x121   :  { %599 = vmatmul.mubr.bf16.vlgmr.msra.gmra.mrb[0].mxu1 %v131_v27 }
 0x122   :  { %638 = vmatprep.mubr.msk.bf16.mxu1 %vm760_vm0, %v759_v0  ;;  %623 = vmatpush3.bf16.msra.mxu1 %v669_v34 }
 0x123   :  { %624 = vmatprep.subr.bf16.mxu1 %v759_v0 }
 0x126   :  { %625 = vmatpush3.bf16.msra.mxu1 %v670_v35 }
 0x127   :  { %626 = vmatprep.subr.bf16.mxu1 %v759_v0 }
 0x12a   :  { %627 = vmatpush3.bf16.msra.mxu1 %v671_v49 }
 0x12b   :  { %628 = vmatprep.subr.bf16.mxu1 %v759_v0 }
 0x12e   :  { %629 = vmatpush3.bf16.msra.mxu1 %v672_v50 }
 0x12f   :  { %630 = vmatprep.subr.bf16.mxu1 %v759_v0 }
 0x132   :  { %631 = vmatpush3.bf16.msra.mxu1 %v673_v51 }
 0x133   :  { %632 = vmatprep.subr.bf16.mxu1 %v759_v0 }
 0x136   :  { %633 = vmatpush3.bf16.msra.mxu1 %v674_v52 }
 0x137   :  { %634 = vmatprep.subr.bf16.mxu1 %v759_v0 }
 0x13a   :  { %635 = vmatpush3.bf16.msra.mxu1 %v675_v53 }
 0x13b   :  { %636 = vmatprep.subr.bf16.mxu1 %v759_v0  ;;  %v529_v0 = vld [vmem:[%s875_s2 + $0x3] ss:$0 sm:$0xff] }
 0x13e   :  { %637 = vmatpush3.bf16.msra.mxu1 %v676_v54 }
 0x1f4   :  { %v239_v37 = vpop.f32.mrb[0].mxu1 }
 0x1f5   :  { %v240_v38 = vadd.f32 %v509_v36, %v239_v37  ;;  %v600_v39 = vpop.f32.mrb[1].mxu1 }
 0x1f6   :  { %v242_v40 = vpop.f32.mrb[2].mxu1 }
 0x1f7   :  { %v246_v41 = vmul.f32 0.70710677, %v240_v38  ;;  %v601_v42 = vpop.f32.mrb[3].mxu1  ;;  %v245_v44 = vmul.f32 0.5, %v240_v38 }
 0x1f9   :  { %679 = verf.f32 %v246_v41 }
 0x203   :  { %v680_v43 = vpop.eup %679 }
 0x204   :  { %v248_v45 = vadd.f32 1.0, %v680_v43 }
 0x206   :  { %v249_v46 = vmul.f32 %v248_v45, %v245_v44 }
 0x208   :  { %v250_v47 = vadd.f32 %v249_v46, %v130_v26 }
 0x20a   :  { %v251_v48 = vpack.c.bf16 %v250_v47, %v250_v47 }
 0x20c   :  { %619 = vmatmul.mubr.bf16.vlgmr.msra.gmra.mrb[4].mxu0 %v251_v48 }
 0x2df   :  { %v359_v56 = vpop.f32.mrb[4].mxu0 }
 0x2e0   :  { %v360_v57 = vadd.f32 %v519_v55, %v359_v56  ;;  %v620_v58 = vpop.f32.mrb[5].mxu0 }
 0x2e1   :  { %v362_v59 = vpop.f32.mrb[6].mxu0 }
 0x2e2   :  { %v366_v60 = vmul.f32 0.70710677, %v360_v57  ;;  %v621_v61 = vpop.f32.mrb[7].mxu0  ;;  %v365_v63 = vmul.f32 0.5, %v360_v57 }
 0x2e4   :  { %681 = verf.f32 %v366_v60 }
 0x2ee   :  { %v682_v62 = vpop.eup %681 }
 0x2ef   :  { %v368_v1 = vadd.f32 1.0, %v682_v62 }
 0x2f1   :  { %v369_v2 = vmul.f32 %v368_v1, %v365_v63 }
 0x2f3   :  { %v370_v3 = vadd.f32 %v369_v2, %v250_v47 }
 0x2f5   :  { %v371_v4 = vpack.c.bf16 %v370_v3, %v370_v3 }
 0x2f7   :  { %639 = vmatmul.mubr.bf16.vlgmr.msra.gmra.mrb[4].mxu1 %v371_v4 }
 0x3ca   :  { %v479_v5 = vpop.f32.mrb[4].mxu1 }
 0x3cb   :  { %v480_v6 = vadd.f32 %v529_v0, %v479_v5  ;;  %v640_v7 = vpop.f32.mrb[5].mxu1 }
 0x3cc   :  { %v482_v8 = vpop.f32.mrb[6].mxu1 }
 0x3cd   :  { %485 = vst [vmem:[#allocation7] sm:$0xff] %v480_v6  ;;  %v641_v9 = vpop.f32.mrb[7].mxu1 }
 0x3ce   :  { %738 = shalt.err (!%p735_p6)
}
 0x3cf   :  { %s739_s2 = scalar_lea.hbm %s876_s3, 128 }
 0x3d0   :  { %p740_p7 = scmp.ne.s32.totalorder %s876_s3, %s739_s2  ;;  %p743_p8 = scmp.lt.u32.totalorder %s739_s2, %s876_s3 }
 0x3d2   :  { %p745_p9 = pnand %p743_p8, %p740_p7 }
 0x3d4   :  { %748 = shalt.err (!%p745_p9)
}
 0x3d5   :  { %495 = dma.vmem_to_hbm [thread:$0]  %s493_s18, 128, %s876_s3, [#allocation4]  }
 0x3d6   :  { %753 = dma.done.wait [#allocation4], 128  }
 0x3d7   :  { %754 = vsyncadd [#allocation4], 4294967168 }
 0x3d8   :  { %499 = vsyncpa [#allocation3], 1 }
 0x3d9   :  { %500 = vsyncpa [#allocation6], 1 }
 0x3da   :  { %501 = vsyncpa [#allocation4], 1 }

// kernel: tpu_custom_call.1
= control target key start
LH: loop header
LB: loop body
LE: loop exit
PB: predicated region body
PF: predicated region fallthrough
CT: control target
= control target key end

     0   :  { %8 = vsyncpa [#allocation3], 0  ;;  %s873_s0 = inlined_call_operand.hbm [shape: bf16[8,64], index: 0, kind: input, shape index: {}]   ;;  %s874_s1 = inlined_call_operand.hbm [shape: bf16[4,128,128], index: 1, kind: input, shape index: {}]   ;;  %s875_s2 = inlined_call_operand.vmem [shape: f32[4,1,128], index: 2, kind: input, shape index: {}]   ;;  %s876_s3 = inlined_call_operand.hbm [shape: f32[8,128], index: 3, kind: output, shape index: {}]  }
   0x1   :  { %9 = vsyncpa [#allocation6], 0 }
   0x2   :  { %10 = vsyncpa [#allocation4], 0  ;;  %s755_s12 = smov [#allocation2]   ;;  %s756_s14 = smov [#allocation5]  }
   0x3   :  { %s17_s13 = sshll.u32 %s755_s12, 4  ;;  %s26_s15 = sshll.u32 %s756_s14, 4  ;;  %s18_s13 = int_to_ptr.vmem [resolvable:$true] %s17_s13  ;;  %s782_s15 = int_to_ptr.vmem [resolvable:$true] %s26_s15 }
   0x4   :  { %s683_s18 = scalar_lea.hbm %s873_s0, 64 }
   0x5   :  { %p684_p0 = scmp.ne.s32.totalorder %s873_s0, %s683_s18  ;;  %p687_p1 = scmp.lt.u32.totalorder %s683_s18, %s873_s0 }
   0x7   :  { %p689_p2 = pnand %p687_p1, %p684_p0 }
   0x9   :  { %692 = shalt.err (!%p689_p2)
}
   0xa   :  { %s693_s23 = scalar_lea.vmem %s18_s13, 64  ;;  %p698_p4 = scmp.lt.s32.totalorder %s18_s13, %s18_s13 }
   0xb   :  { %p694_p3 = scmp.ne.s32.totalorder %s18_s13, %s693_s23  ;;  %p699_p5 = scmp.lt.s32.totalorder %s693_s23, %s693_s23 }
   0xd   :  { %p700_p6 = por %p699_p5, %p698_p4 }
   0xf   :  { %p701_p7 = pnand %p700_p6, %p694_p3 }
  0x11   :  { %704 = shalt.err (!%p701_p7)
}
  0x12   :  { %20 = dma.hbm_to_vmem [thread:$0]  %s873_s0, 64, %s18_s13, [#allocation3]  }
  0x13   :  { %s705_s28 = scalar_lea.hbm %s874_s1, 4096 }
  0x14   :  { %p706_p8 = scmp.ne.s32.totalorder %s874_s1, %s705_s28  ;;  %p709_p9 = scmp.lt.u32.totalorder %s705_s28, %s874_s1 }
  0x16   :  { %p711_p10 = pnand %p709_p9, %p706_p8 }
  0x18   :  { %714 = shalt.err (!%p711_p10)
}
  0x19   :  { %s715_s6 = scalar_lea.vmem %s782_s15, 4096  ;;  %p720_p12 = scmp.lt.s32.totalorder %s782_s15, %s782_s15 }
  0x1a   :  { %p716_p11 = scmp.ne.s32.totalorder %s782_s15, %s715_s6  ;;  %p721_p13 = scmp.lt.s32.totalorder %s715_s6, %s715_s6 }
  0x1c   :  { %p722_p0 = por %p721_p13, %p720_p12 }
  0x1e   :  { %p723_p1 = pnand %p722_p0, %p716_p11 }
  0x20   :  { %726 = shalt.err (!%p723_p1)
}
  0x21   :  { %s757_s0 = smov 64   ;;  %s758_s7 = smov 4  }
  0x22   :  { %32 = dma.hbm_to_vmem [thread:$0]  %s874_s1, 4096, %s782_s15, [#allocation6], %s757_s0, %s757_s0, %s758_s7  }
  0x23   :  { %749 = dma.done.wait [#allocation3], 64  }
  0x24   :  { %750 = vsyncadd [#allocation3], 4294967232 }
  0x25   :  { %751 = dma.done.wait [#allocation6], 4096  }
  0x26   :  { %752 = vsyncadd [#allocation6], 4294963200  ;;  %v759_v0 = vmov 0.0   ;;  %vm760_vm0 = vmmov 0   ;;  %v649_v1 = vld [vmem:[#allocation5] sm:$0xff]   ;;  %v650_v2 = vld [vmem:[#allocation5 + $0x8] sm:$0xff]  }
  0x27   :  { %570 = vmatprep.subr.bf16.mxu0 %v759_v0  ;;  %578 = vmatprep.mubr.msk.bf16.mxu0 %vm760_vm0, %v759_v0  ;;  %v653_v3 = vld [vmem:[#allocation5 + $0x40] sm:$0xff]   ;;  %v651_v4 = vld [vmem:[#allocation5 + $0x10] sm:$0xff]   ;;  %vm82_vm1 = vcmask 523264   ;;  %v654_v5 = vld [vmem:[#allocation5 + $0x48] sm:$0xff]   ;;  %s761_s17 = smov [#allocation7]  }
  0x28   :  { %582 = vmatprep.subr.bf16.mxu1 %v759_v0  ;;  %598 = vmatprep.mubr.msk.bf16.mxu1 %vm760_vm0, %v759_v0  ;;  %v652_v6 = vld [vmem:[#allocation5 + $0x18] sm:$0xff]   ;;  %v655_v7 = vld [vmem:[#allocation5 + $0x50] sm:$0xff]   ;;  %v657_v10 = vld [vmem:[#allocation5 + $0x60] sm:$0xff]   ;;  %s492_s18 = sshll.u32 %s761_s17, 4  ;;  %s493_s18 = int_to_ptr.vmem [resolvable:$true] %s492_s18 }
  0x29   :  { %571 = vmatpush3.bf16.msra.mxu0 %v649_v1  ;;  %583 = vmatpush3.bf16.msra.mxu1 %v653_v3  ;;  %v42_v8 = vld [vmem:[#allocation2] sm:$0xf]  ;;  %v658_v11 = vld [vmem:[#allocation5 + $0x68] sm:$0xff]   ;;  %v659_v12 = vld [vmem:[#allocation5 + $0x70] sm:$0xff]   ;;  %s727_s19 = scalar_lea.vmem %s493_s18, 128  ;;  %p732_p3 = scmp.lt.s32.totalorder %s493_s18, %s493_s18 }
  0x2a   :  { %572 = vmatprep.subr.bf16.mxu0 %v759_v0  ;;  %584 = vmatprep.subr.bf16.mxu1 %v759_v0  ;;  %v656_v9 = vld [vmem:[#allocation5 + $0x58] sm:$0xff]   ;;  %v661_v14 = vld [vmem:[#allocation5 + $0x80] sm:$0xff]   ;;  %v662_v15 = vld [vmem:[#allocation5 + $0x88] sm:$0xff]   ;;  %p728_p2 = scmp.ne.s32.totalorder %s493_s18, %s727_s19  ;;  %p733_p4 = scmp.lt.s32.totalorder %s727_s19, %s727_s19 }
  0x2b   :  { %v660_v13 = vld [vmem:[#allocation5 + $0x78] sm:$0xff]   ;;  %v663_v28 = vld [vmem:[#allocation5 + $0x90] sm:$0xff]   ;;  %v665_v30 = vld [vmem:[#allocation5 + $0xa0] sm:$0xff]  }
  0x2c   :  { %v502_v16 = vld [vmem:[%s875_s2] ss:$0 sm:$0xff]  ;;  %v666_v31 = vld [vmem:[#allocation5 + $0xa8] sm:$0xff]   ;;  %v667_v32 = vld [vmem:[#allocation5 + $0xb0] sm:$0xff]   ;;  %p734_p5 = por %p733_p4, %p732_p3 }
  0x2d   :  { %573 = vmatpush3.bf16.msra.mxu0 %v650_v2  ;;  %585 = vmatpush3.bf16.msra.mxu1 %v654_v5  ;;  %v664_v29 = vld [vmem:[#allocation5 + $0x98] sm:$0xff]   ;;  %v669_v34 = vld [vmem:[#allocation5 + $0xc0] sm:$0xff]   ;;  %v670_v35 = vld [vmem:[#allocation5 + $0xc8] sm:$0xff]  }
  0x2e   :  { %574 = vmatprep.subr.bf16.mxu0 %v759_v0  ;;  %586 = vmatprep.subr.bf16.mxu1 %v759_v0  ;;  %v668_v33 = vld [vmem:[#allocation5 + $0xb8] sm:$0xff]   ;;  %v671_v49 = vld [vmem:[#allocation5 + $0xd0] sm:$0xff]   ;;  %v673_v51 = vld [vmem:[#allocation5 + $0xe0] sm:$0xff]   ;;  %p735_p6 = pnand %p734_p5, %p728_p2 }
  0x2f   :  { %v509_v36 = vld [vmem:[%s875_s2 + $0x1] ss:$0 sm:$0xff]  ;;  %v674_v52 = vld [vmem:[#allocation5 + $0xe8] sm:$0xff]   ;;  %v675_v53 = vld [vmem:[#allocation5 + $0xf0] sm:$0xff]  }
  0x30   :  { %v672_v50 = vld [vmem:[#allocation5 + $0xd8] sm:$0xff]  }
  0x31   :  { %575 = vmatpush3.bf16.msra.mxu0 %v651_v4  ;;  %587 = vmatpush3.bf16.msra.mxu1 %v655_v7  ;;  %v676_v54 = vld [vmem:[#allocation5 + $0xf8] sm:$0xff]  }
  0x32   :  { %576 = vmatprep.subr.bf16.mxu0 %v759_v0  ;;  %588 = vmatprep.subr.bf16.mxu1 %v759_v0  ;;  %v519_v55 = vld [vmem:[%s875_s2 + $0x2] ss:$0 sm:$0xff] }
  0x35   :  { %577 = vmatpush3.bf16.msra.mxu0 %v652_v6  ;;  %589 = vmatpush3.bf16.msra.mxu1 %v656_v9 }
  0x36   :  { %602 = vmatprep.subr.bf16.mxu0 %v759_v0  ;;  %590 = vmatprep.subr.bf16.mxu1 %v759_v0 }
  0x38   :  { %579 = vmatmul.mubr.msk.bf16.vlgmr.msra.gmra.mrb[0].mxu0 %vm82_vm1, %v42_v8 }
  0x39   :  { %618 = vmatprep.mubr.msk.bf16.mxu0 %vm760_vm0, %v759_v0  ;;  %591 = vmatpush3.bf16.msra.mxu1 %v657_v10 }
  0x3a   :  { %592 = vmatprep.subr.bf16.mxu1 %v759_v0  ;;  %603 = vmatpush3.bf16.msra.mxu0 %v661_v14 }
  0x3b   :  { %604 = vmatprep.subr.bf16.mxu0 %v759_v0 }
  0x3d   :  { %593 = vmatpush3.bf16.msra.mxu1 %v658_v11 }
  0x3e   :  { %594 = vmatprep.subr.bf16.mxu1 %v759_v0  ;;  %605 = vmatpush3.bf16.msra.mxu0 %v662_v15 }
  0x3f   :  { %606 = vmatprep.subr.bf16.mxu0 %v759_v0 }
  0x41   :  { %595 = vmatpush3.bf16.msra.mxu1 %v659_v12 }
  0x42   :  { %596 = vmatprep.subr.bf16.mxu1 %v759_v0  ;;  %607 = vmatpush3.bf16.msra.mxu0 %v663_v28 }
  0x43   :  { %608 = vmatprep.subr.bf16.mxu0 %v759_v0 }
  0x45   :  { %597 = vmatpush3.bf16.msra.mxu1 %v660_v13 }
  0x46   :  { %622 = vmatprep.subr.bf16.mxu1 %v759_v0  ;;  %609 = vmatpush3.bf16.msra.mxu0 %v664_v29 }
  0x47   :  { %610 = vmatprep.subr.bf16.mxu0 %v759_v0 }
  0x4a   :  { %611 = vmatpush3.bf16.msra.mxu0 %v665_v30 }
  0x4b   :  { %612 = vmatprep.subr.bf16.mxu0 %v759_v0 }
  0x4e   :  { %613 = vmatpush3.bf16.msra.mxu0 %v666_v31 }
  0x4f   :  { %614 = vmatprep.subr.bf16.mxu0 %v759_v0 }
  0x52   :  { %615 = vmatpush3.bf16.msra.mxu0 %v667_v32 }
  0x53   :  { %616 = vmatprep.subr.bf16.mxu0 %v759_v0 }
  0x56   :  { %617 = vmatpush3.bf16.msra.mxu0 %v668_v33 }
 0x10b   :  { %v120_v17 = vpop.f32.mrb[0].mxu0 }
 0x10c   :  { %v121_v18 = vadd.f32 %v502_v16, %v120_v17  ;;  %v580_v19 = vpop.f32.mrb[1].mxu0 }
 0x10d   :  { %v123_v20 = vpop.f32.mrb[2].mxu0 }
 0x10e   :  { %v127_v21 = vmul.f32 0.70710677, %v121_v18  ;;  %v581_v22 = vpop.f32.mrb[3].mxu0  ;;  %v126_v24 = vmul.f32 0.5, %v121_v18 }
 0x110   :  { %677 = verf.f32 %v127_v21 }
 0x11a   :  { %v678_v23 = vpop.eup %677 }
 0x11b   :  { %v129_v25 = vadd.f32 1.0, %v678_v23 }
 0x11d   :  { %v130_v26 = vmul.f32 %v129_v25, %v126_v24 }
 0x11f   :  { %v131_v27 = vpack.c.bf16 %v130_v26, %v130_v26 }
 0x121   :  { %599 = vmatmul.mubr.bf16.vlgmr.msra.gmra.mrb[0].mxu1 %v131_v27 }
 0x122   :  { %638 = vmatprep.mubr.msk.bf16.mxu1 %vm760_vm0, %v759_v0  ;;  %623 = vmatpush3.bf16.msra.mxu1 %v669_v34 }
 0x123   :  { %624 = vmatprep.subr.bf16.mxu1 %v759_v0 }
 0x126   :  { %625 = vmatpush3.bf16.msra.mxu1 %v670_v35 }
 0x127   :  { %626 = vmatprep.subr.bf16.mxu1 %v759_v0 }
 0x12a   :  { %627 = vmatpush3.bf16.msra.mxu1 %v671_v49 }
 0x12b   :  { %628 = vmatprep.subr.bf16.mxu1 %v759_v0 }
 0x12e   :  { %629 = vmatpush3.bf16.msra.mxu1 %v672_v50 }
 0x12f   :  { %630 = vmatprep.subr.bf16.mxu1 %v759_v0 }
 0x132   :  { %631 = vmatpush3.bf16.msra.mxu1 %v673_v51 }
 0x133   :  { %632 = vmatprep.subr.bf16.mxu1 %v759_v0 }
 0x136   :  { %633 = vmatpush3.bf16.msra.mxu1 %v674_v52 }
 0x137   :  { %634 = vmatprep.subr.bf16.mxu1 %v759_v0 }
 0x13a   :  { %635 = vmatpush3.bf16.msra.mxu1 %v675_v53 }
 0x13b   :  { %636 = vmatprep.subr.bf16.mxu1 %v759_v0  ;;  %v529_v0 = vld [vmem:[%s875_s2 + $0x3] ss:$0 sm:$0xff] }
 0x13e   :  { %637 = vmatpush3.bf16.msra.mxu1 %v676_v54 }
 0x1f4   :  { %v239_v37 = vpop.f32.mrb[0].mxu1 }
 0x1f5   :  { %v240_v38 = vadd.f32 %v509_v36, %v239_v37  ;;  %v600_v39 = vpop.f32.mrb[1].mxu1 }
 0x1f6   :  { %v242_v40 = vpop.f32.mrb[2].mxu1 }
 0x1f7   :  { %v246_v41 = vmul.f32 0.70710677, %v240_v38  ;;  %v601_v42 = vpop.f32.mrb[3].mxu1  ;;  %v245_v44 = vmul.f32 0.5, %v240_v38 }
 0x1f9   :  { %679 = verf.f32 %v246_v41 }
 0x203   :  { %v680_v43 = vpop.eup %679 }
 0x204   :  { %v248_v45 = vadd.f32 1.0, %v680_v43 }
 0x206   :  { %v249_v46 = vmul.f32 %v248_v45, %v245_v44 }
 0x208   :  { %v250_v47 = vadd.f32 %v249_v46, %v130_v26 }
 0x20a   :  { %v251_v48 = vpack.c.bf16 %v250_v47, %v250_v47 }
 0x20c   :  { %619 = vmatmul.mubr.bf16.vlgmr.msra.gmra.mrb[4].mxu0 %v251_v48 }
 0x2df   :  { %v359_v56 = vpop.f32.mrb[4].mxu0 }
 0x2e0   :  { %v360_v57 = vadd.f32 %v519_v55, %v359_v56  ;;  %v620_v58 = vpop.f32.mrb[5].mxu0 }
 0x2e1   :  { %v362_v59 = vpop.f32.mrb[6].mxu0 }
 0x2e2   :  { %v366_v60 = vmul.f32 0.70710677, %v360_v57  ;;  %v621_v61 = vpop.f32.mrb[7].mxu0  ;;  %v365_v63 = vmul.f32 0.5, %v360_v57 }
 0x2e4   :  { %681 = verf.f32 %v366_v60 }
 0x2ee   :  { %v682_v62 = vpop.eup %681 }
 0x2ef   :  { %v368_v1 = vadd.f32 1.0, %v682_v62 }
 0x2f1   :  { %v369_v2 = vmul.f32 %v368_v1, %v365_v63 }
 0x2f3   :  { %v370_v3 = vadd.f32 %v369_v2, %v250_v47 }
 0x2f5   :  { %v371_v4 = vpack.c.bf16 %v370_v3, %v370_v3 }
 0x2f7   :  { %639 = vmatmul.mubr.bf16.vlgmr.msra.gmra.mrb[4].mxu1 %v371_v4 }
 0x3ca   :  { %v479_v5 = vpop.f32.mrb[4].mxu1 }
 0x3cb   :  { %v480_v6 = vadd.f32 %v529_v0, %v479_v5  ;;  %v640_v7 = vpop.f32.mrb[5].mxu1 }
 0x3cc   :  { %v482_v8 = vpop.f32.mrb[6].mxu1 }
 0x3cd   :  { %485 = vst [vmem:[#allocation7] sm:$0xff] %v480_v6  ;;  %v641_v9 = vpop.f32.mrb[7].mxu1 }
 0x3ce   :  { %738 = shalt.err (!%p735_p6)
}
 0x3cf   :  { %s739_s2 = scalar_lea.hbm %s876_s3, 128 }
 0x3d0   :  { %p740_p7 = scmp.ne.s32.totalorder %s876_s3, %s739_s2  ;;  %p743_p8 = scmp.lt.u32.totalorder %s739_s2, %s876_s3 }
 0x3d2   :  { %p745_p9 = pnand %p743_p8, %p740_p7 }
 0x3d4   :  { %748 = shalt.err (!%p745_p9)
}
 0x3d5   :  { %495 = dma.vmem_to_hbm [thread:$0]  %s493_s18, 128, %s876_s3, [#allocation4]  }
 0x3d6   :  { %753 = dma.done.wait [#allocation4], 128  }
 0x3d7   :  { %754 = vsyncadd [#allocation4], 4294967168 }
 0x3d8   :  { %499 = vsyncpa [#allocation3], 1 }
 0x3d9   :  { %500 = vsyncpa [#allocation6], 1 }
 0x3da   :  { %501 = vsyncpa [#allocation4], 1 }

</bundles_post_ra>
